<compile_context>
chip_gen: v7x
topology: tpu7x:2x2x1
jax: 0.10.0
libtpu: 0.0.40
codegen_flags: <defaults>
</compile_context>

<pallas_src>
import functools

import jax
import jax.numpy as jnp
from jax.experimental import pallas as pl
from jax.experimental.pallas import tpu as pltpu


_LANE = 128
_SUBLANE = 8


def _round_up(x, m):
    return ((x + m - 1) // m) * m


def _softplus(z):
    # Numerically stable softplus, matches F.softplus semantics.
    return jnp.maximum(z, 0.0) + jnp.log1p(jnp.exp(-jnp.abs(z)))


def _make_kernel(num_hidden, n_policy, head_pad):
    """Kernel for `num_hidden` (Linear+ReLU) layers + one fused head matmul.

    Ref layout:
      x_ref, (w_i, b_i) * num_hidden, w_head, b_head, out_ref
    out_ref columns: [0, n_policy)  -> softplus(logits) + 1e-8 (Dirichlet conc)
                     n_policy       -> raw value
                     > n_policy     -> zero padding (sliced off in the wrapper)
    """
    # Only run softplus transcendentals on the lanes that can hold policy cols.
    sp_lanes = min(head_pad, _round_up(max(n_policy, 1), _LANE))

    def kernel(x_ref, *refs):
        h = x_ref[...]
        idx = 0
        for _ in range(num_hidden):
            w_ref, b_ref = refs[idx], refs[idx + 1]
            idx += 2
            h = jnp.dot(h, w_ref[...], preferred_element_type=jnp.float32)
            h = jnp.maximum(h + b_ref[...], 0.0)  # Linear + ReLU

        wh_ref, bh_ref = refs[idx], refs[idx + 1]
        out_ref = refs[idx + 2]

        z = jnp.dot(h, wh_ref[...], preferred_element_type=jnp.float32)
        z = z + bh_ref[...]

        if sp_lanes >= head_pad:
            # Head fits in the softplus lane window: single select + store.
            col = jax.lax.broadcasted_iota(jnp.int32, z.shape, dimension=1)
            out_ref[...] = jnp.where(col < n_policy, _softplus(z) + 1e-8, z)
        else:
            # Wide head: softplus only on the first sp_lanes lanes; the rest
            # (value column padding region) is stored raw.
            z_sp = z[:, :sp_lanes]
            col = jax.lax.broadcasted_iota(jnp.int32, z_sp.shape, dimension=1)
            out_ref[:, :sp_lanes] = jnp.where(
                col < n_policy, _softplus(z_sp) + 1e-8, z_sp)
            out_ref[:, sp_lanes:] = z[:, sp_lanes:]

    return kernel


def fuse_heads(params):
    """Fuse policy + value heads into one lane-padded weight.

    Call once at init (hoisted out of the per-forward path).  Idempotent.
    """
    if "w_head" in params:
        return params
    wp, bp = params["policy"]
    wv, bv = params["value"]
    w_head = jnp.concatenate([wp, wv], axis=1)   # (h, n_policy + 1)
    b_head = jnp.concatenate([bp, bv], axis=1)   # (1, n_policy + 1)
    head_w = w_head.shape[1]
    head_pad = _round_up(max(head_w, _LANE), _LANE)  # lane-dense output slab
    if head_pad != head_w:
        w_head = jnp.pad(w_head, ((0, 0), (0, head_pad - head_w)))
        b_head = jnp.pad(b_head, ((0, 0), (0, head_pad - head_w)))
    out = dict(params)
    out["w_head"] = w_head
    out["b_head"] = b_head
    return out


def mlp_actor_critic_forward(x, params, *, tile_b=1024, use_pallas=None,
                             min_pallas_batch=512):
    """MLPActorCritic forward.

    Args:
      x: (B, input_dim) float32.
      params: dict with
        'hidden': list of (W, b), W (in, out), b (1, out)
        'policy': (Wp, bp), Wp (h, n_assets+1), bp (1, n_assets+1)
        'value':  (Wv, bv), Wv (h, 1), bv (1, 1)
        optionally 'w_head'/'b_head' pre-fused via fuse_heads().
      tile_b: max rows per grid step (rounded/split adaptively).
      use_pallas: True/False to force; None -> Pallas only for B >= min_pallas_batch.
    Returns:
      (concentration (B, n_assets+1), value (B,))
    """
    hidden = params["hidden"]
    n_policy = params["policy"][0].shape[1]  # n_assets + 1
    B, in_dim = x.shape

    if use_pallas is None:
        use_pallas = B >= min_pallas_batch
    if not use_pallas:
        # Tiny batch: custom-call launch + DMA setup exceeds a fused XLA MLP.
        h = x
        for w, b in hidden:
            h = jnp.maximum(h @ w + b, 0.0)
        wp, bp = params["policy"]
        wv, bv = params["value"]
        conc = _softplus(h @ wp + bp) + 1e-8
        value = (h @ wv + bv)[:, 0]
        return conc, value

    prepared = fuse_heads(params)  # no-op if fused at init
    w_head, b_head = prepared["w_head"], prepared["b_head"]
    head_pad = w_head.shape[1]
    num_hidden = len(hidden)

    # --- Adaptive batch tiling: choose step count first, then tb. ---
    n_steps = max(1, pl.cdiv(B, tile_b))
    if n_steps > 1 and n_steps % 2 == 1:
        n_steps += 1  # even step count so v7x's 2 TCs split the parallel axis
    tb = _round_up(pl.cdiv(B, n_steps), _SUBLANE)
    b_pad = n_steps * tb  # over-pad is at most 8 * n_steps rows
    if b_pad != B:
        x = jnp.pad(x, ((0, b_pad - B), (0, 0)))
    grid = (n_steps,)

    flat_inputs = [x]
    for w, b in hidden:
        flat_inputs.extend([w, b])
    flat_inputs.extend([w_head, b_head])

    # x / output move per grid step; weights & biases are grid-invariant
    # (constant index map -> VMEM resident, DMA'd once).
    in_specs = [pl.BlockSpec((tb, in_dim), lambda i: (i, 0))]
    for arr in flat_inputs[1:]:
        in_specs.append(pl.BlockSpec(arr.shape, lambda i: (0, 0)))
    out_spec = pl.BlockSpec((tb, head_pad), lambda i: (i, 0))

    # --- Advisory cost estimate (helps XLA overlap surrounding ops). ---
    flops = 0
    prev = in_dim
    for w, _ in hidden:
        flops += 2 * b_pad * prev * w.shape[1]
        prev = w.shape[1]
    flops += 2 * b_pad * prev * head_pad
    bytes_accessed = 4 * (b_pad * in_dim + b_pad * head_pad)
    for w, b in hidden:
        bytes_accessed += 4 * (w.size + b.size)
    bytes_accessed += 4 * (w_head.size + b_head.size)
    sp_lanes = min(head_pad, _round_up(max(n_policy, 1), _LANE))
    cost = pl.CostEstimate(flops=flops,
                           transcendentals=2 * b_pad * sp_lanes,
                           bytes_accessed=bytes_accessed)

    # --- VMEM budget: only set an explicit limit if an aggressive tile needs
    #     more than the default scoped limit; cap at v7x's 64 MiB physical. ---
    max_feat = max([in_dim, head_pad] + [w.shape[1] for w, _ in hidden])
    vmem_need = 2 * 4 * tb * (in_dim + head_pad)            # double-buffered I/O
    vmem_need += 2 * 4 * sum(w.size + b.size for w, b in hidden)
    vmem_need += 2 * 4 * (w_head.size + b_head.size)
    vmem_need += 4 * 4 * tb * max_feat                      # activation headroom
    compiler_kwargs = dict(dimension_semantics=("parallel",))
    if vmem_need > 30 * (1 << 20):
        compiler_kwargs["vmem_limit_bytes"] = min(int(vmem_need * 1.25), 64 << 20)

    out = pl.pallas_call(
        _make_kernel(num_hidden, n_policy, head_pad),
        out_shape=jax.ShapeDtypeStruct((b_pad, head_pad), jnp.float32),
        grid=grid,
        in_specs=in_specs,
        out_specs=out_spec,
        compiler_params=pltpu.CompilerParams(**compiler_kwargs),
        cost_estimate=cost,
    )(*flat_inputs)

    conc = out[:B, :n_policy]
    value = out[:B, n_policy]  # value_head(x).squeeze(-1)
    return conc, value


def init_params(key, input_dim, hidden_dims, n_assets):
    """PyTorch-style (uniform +/- 1/sqrt(fan_in)) initialization."""
    params = {"hidden": []}
    prev = input_dim
    for h in hidden_dims:
        key, kw, kb = jax.random.split(key, 3)
        bound = 1.0 / jnp.sqrt(prev)
        w = jax.random.uniform(kw, (prev, h), jnp.float32, -bound, bound)
        b = jax.random.uniform(kb, (1, h), jnp.float32, -bound, bound)
        params["hidden"].append((w, b))
        prev = h

    key, kw, kb = jax.random.split(key, 3)
    bound = 1.0 / jnp.sqrt(prev)
    wp = jax.random.uniform(kw, (prev, n_assets + 1), jnp.float32, -bound, bound)
    bp = jax.random.uniform(kb, (1, n_assets + 1), jnp.float32, -bound, bound)
    params["policy"] = (wp, bp)

    key, kw, kb = jax.random.split(key, 3)
    wv = jax.random.uniform(kw, (prev, 1), jnp.float32, -bound, bound)
    bv = jax.random.uniform(kb, (1, 1), jnp.float32, -bound, bound)
    params["value"] = (wv, bv)
    return params


def _reference_forward(x, params):
    """Pure-JAX reference for correctness checking."""
    h = x
    for w, b in params["hidden"]:
        h = jnp.maximum(h @ w + b, 0.0)
    wp, bp = params["policy"]
    wv, bv = params["value"]
    conc = jax.nn.softplus(h @ wp + bp) + 1e-8
    value = (h @ wv + bv)[:, 0]
    return conc, value


if __name__ == "__main__":
    # Small shapes consistent with the module's forward:
    #   batch=8, input_dim=16, hidden_dims=[32, 32], n_assets=8
    B, INPUT_DIM, HIDDEN_DIMS, N_ASSETS = 8, 16, [32, 32], 8

    key = jax.random.PRNGKey(0)
    key, kx = jax.random.split(key)
    x = jax.random.normal(kx, (B, INPUT_DIM), jnp.float32)
    params = init_params(key, INPUT_DIM, HIDDEN_DIMS, N_ASSETS)
    fused = fuse_heads(params)  # head fusion hoisted out of the forward path

    # Force the Pallas path so the kernel is exercised at this tiny shape.
    fwd = jax.jit(functools.partial(mlp_actor_critic_forward, use_pallas=True))

    conc, value = fwd(x, fused)
    jax.block_until_ready((conc, value))

    # Validate against the pure-JAX reference.
    conc_ref, value_ref = _reference_forward(x, params)
    assert conc.shape == (B, N_ASSETS + 1)
    assert value.shape == (B,)
    assert bool(jnp.all(conc > 0.0))  # valid Dirichlet concentration
    assert jnp.allclose(conc, conc_ref, atol=1e-5, rtol=1e-5)
    assert jnp.allclose(value, value_ref, atol=1e-5, rtol=1e-5)

    # Awkward batch exercises adaptive tiling (no over-pad to a tile multiple).
    B2 = 300
    key, kx2 = jax.random.split(key)
    x2 = jax.random.normal(kx2, (B2, INPUT_DIM), jnp.float32)
    conc2, value2 = fwd(x2, fused)
    jax.block_until_ready((conc2, value2))
    conc2_ref, value2_ref = _reference_forward(x2, params)
    assert conc2.shape == (B2, N_ASSETS + 1) and value2.shape == (B2,)
    assert jnp.allclose(conc2, conc2_ref, atol=1e-5, rtol=1e-5)
    assert jnp.allclose(value2, value2_ref, atol=1e-5, rtol=1e-5)

    # TODO(synk): torch.distributions.Dirichlet (sampling / log_prob) has no
    # Pallas equivalent; the kernel returns the concentration parameters that
    # fully define it, plus the value.
    print("KERNEL_OK")
</pallas_src>

<mosaic_0001>
module attributes {stable_mosaic.version = 11 : i64} {
  func.func @kernel(%arg0: i32, %arg1: memref<8x16xf32, #tpu.memory_space<vmem>>, %arg2: memref<16x32xf32, #tpu.memory_space<vmem>>, %arg3: memref<1x32xf32, #tpu.memory_space<vmem>>, %arg4: memref<32x32xf32, #tpu.memory_space<vmem>>, %arg5: memref<1x32xf32, #tpu.memory_space<vmem>>, %arg6: memref<32x128xf32, #tpu.memory_space<vmem>>, %arg7: memref<1x128xf32, #tpu.memory_space<vmem>>, %arg8: memref<8x128xf32, #tpu.memory_space<vmem>>) attributes {dimension_semantics = [#tpu.dimension_semantics<parallel>], iteration_bounds = array<i64: 1>, scalar_prefetch = 0 : i64, scratch_operands = 0 : i64, tpu.core_type = #tpu.core_type<tc>, window_params = [{transform_indices = @transform_0, window_bounds = array<i64: 8, 16>}, {pipeline_mode = #tpu.pipeline_mode<synchronous>, transform_indices = @transform_1, window_bounds = array<i64: 16, 32>}, {pipeline_mode = #tpu.pipeline_mode<synchronous>, transform_indices = @transform_2, window_bounds = array<i64: 1, 32>}, {pipeline_mode = #tpu.pipeline_mode<synchronous>, transform_indices = @transform_3, window_bounds = array<i64: 32, 32>}, {pipeline_mode = #tpu.pipeline_mode<synchronous>, transform_indices = @transform_4, window_bounds = array<i64: 1, 32>}, {pipeline_mode = #tpu.pipeline_mode<synchronous>, transform_indices = @transform_5, window_bounds = array<i64: 32, 128>}, {pipeline_mode = #tpu.pipeline_mode<synchronous>, transform_indices = @transform_6, window_bounds = array<i64: 1, 128>}, {transform_indices = @transform_7, window_bounds = array<i64: 8, 128>}]} {
    %c0 = arith.constant 0 : index
    %c0_0 = arith.constant 0 : index
    %0 = vector.load %arg1[%c0, %c0_0] : memref<8x16xf32, #tpu.memory_space<vmem>>, vector<8x16xf32>
    %c0_1 = arith.constant 0 : index
    %c0_2 = arith.constant 0 : index
    %1 = vector.load %arg2[%c0_1, %c0_2] : memref<16x32xf32, #tpu.memory_space<vmem>>, vector<16x32xf32>
    %cst = arith.constant dense<0.000000e+00> : vector<8x32xf32>
    %2 = tpu.matmul %0, %1, %cst {dimension_numbers = #tpu.dot_dimension_numbers<[1], [0], [0], [1], [0, 0, 1, 1], [], []>} : vector<8x16xf32>, vector<16x32xf32>, vector<8x32xf32> -> vector<8x32xf32>
    %c0_3 = arith.constant 0 : index
    %c0_4 = arith.constant 0 : index
    %3 = vector.load %arg3[%c0_3, %c0_4] : memref<1x32xf32, #tpu.memory_space<vmem>>, vector<1x32xf32>
    %4 = vector.broadcast %3 : vector<1x32xf32> to vector<8x32xf32>
    %5 = arith.addf %2, %4 : vector<8x32xf32>
    %cst_5 = arith.constant 0.000000e+00 : f32
    %6 = vector.broadcast %cst_5 : f32 to vector<8x32xf32>
    %7 = arith.maximumf %5, %6 : vector<8x32xf32>
    %c0_6 = arith.constant 0 : index
    %c0_7 = arith.constant 0 : index
    %8 = vector.load %arg4[%c0_6, %c0_7] : memref<32x32xf32, #tpu.memory_space<vmem>>, vector<32x32xf32>
    %cst_8 = arith.constant dense<0.000000e+00> : vector<8x32xf32>
    %9 = tpu.matmul %7, %8, %cst_8 {dimension_numbers = #tpu.dot_dimension_numbers<[1], [0], [0], [1], [0, 0, 1, 1], [], []>} : vector<8x32xf32>, vector<32x32xf32>, vector<8x32xf32> -> vector<8x32xf32>
    %c0_9 = arith.constant 0 : index
    %c0_10 = arith.constant 0 : index
    %10 = vector.load %arg5[%c0_9, %c0_10] : memref<1x32xf32, #tpu.memory_space<vmem>>, vector<1x32xf32>
    %11 = vector.broadcast %10 : vector<1x32xf32> to vector<8x32xf32>
    %12 = arith.addf %9, %11 : vector<8x32xf32>
    %cst_11 = arith.constant 0.000000e+00 : f32
    %13 = vector.broadcast %cst_11 : f32 to vector<8x32xf32>
    %14 = arith.maximumf %12, %13 : vector<8x32xf32>
    %c0_12 = arith.constant 0 : index
    %c0_13 = arith.constant 0 : index
    %15 = vector.load %arg6[%c0_12, %c0_13] : memref<32x128xf32, #tpu.memory_space<vmem>>, vector<32x128xf32>
    %cst_14 = arith.constant dense<0.000000e+00> : vector<8x128xf32>
    %16 = tpu.matmul %14, %15, %cst_14 {dimension_numbers = #tpu.dot_dimension_numbers<[1], [0], [0], [1], [0, 0, 1, 1], [], []>} : vector<8x32xf32>, vector<32x128xf32>, vector<8x128xf32> -> vector<8x128xf32>
    %c0_15 = arith.constant 0 : index
    %c0_16 = arith.constant 0 : index
    %17 = vector.load %arg7[%c0_15, %c0_16] : memref<1x128xf32, #tpu.memory_space<vmem>>, vector<1x128xf32>
    %18 = vector.broadcast %17 : vector<1x128xf32> to vector<8x128xf32>
    %19 = arith.addf %16, %18 : vector<8x128xf32>
    %20 = tpu.iota {dimensions = array<i32: 1>} : vector<8x128xi32>
    %c9_i32 = arith.constant 9 : i32
    %21 = vector.broadcast %c9_i32 : i32 to vector<8x128xi32>
    %22 = arith.cmpi slt, %20, %21 : vector<8x128xi32>
    %cst_17 = arith.constant 0.000000e+00 : f32
    %23 = vector.broadcast %cst_17 : f32 to vector<8x128xf32>
    %24 = arith.maximumf %19, %23 : vector<8x128xf32>
    %25 = math.absf %19 : vector<8x128xf32>
    %cst_18 = arith.constant 0.000000e+00 : f32
    %26 = vector.broadcast %cst_18 : f32 to vector<8x128xf32>
    %27 = arith.subf %26, %25 : vector<8x128xf32>
    %28 = math.exp %27 : vector<8x128xf32>
    %29 = math.log1p %28 : vector<8x128xf32>
    %30 = arith.addf %24, %29 : vector<8x128xf32>
    %cst_19 = arith.constant 9.99999993E-9 : f32
    %31 = vector.broadcast %cst_19 : f32 to vector<8x128xf32>
    %32 = arith.addf %30, %31 : vector<8x128xf32>
    %33 = arith.select %22, %32, %19 : vector<8x128xi1>, vector<8x128xf32>
    %c0_20 = arith.constant 0 : index
    %c0_21 = arith.constant 0 : index
    %34 = vector.load %arg8[%c0_20, %c0_21] : memref<8x128xf32, #tpu.memory_space<vmem>>, vector<8x128xf32>
    tpu.vector_store %arg8[%c0_20, %c0_21], %33 {strides = array<i32>} : memref<8x128xf32, #tpu.memory_space<vmem>>, vector<8x128xf32>,
    return
  }
  func.func @transform_0(%arg0: i32) -> (i32, i32) {
    %c0_i32 = arith.constant 0 : i32
    %c0_i32_0 = arith.constant 0 : i32
    return %arg0, %c0_i32 : i32, i32
  }
  func.func @transform_1(%arg0: i32) -> (i32, i32) {
    %c0_i32 = arith.constant 0 : i32
    %c0_i32_0 = arith.constant 0 : i32
    %c0_i32_1 = arith.constant 0 : i32
    return %c0_i32, %c0_i32_0 : i32, i32
  }
  func.func @transform_2(%arg0: i32) -> (i32, i32) {
    %c0_i32 = arith.constant 0 : i32
    %c0_i32_0 = arith.constant 0 : i32
    %c0_i32_1 = arith.constant 0 : i32
    return %c0_i32, %c0_i32_0 : i32, i32
  }
  func.func @transform_3(%arg0: i32) -> (i32, i32) {
    %c0_i32 = arith.constant 0 : i32
    %c0_i32_0 = arith.constant 0 : i32
    %c0_i32_1 = arith.constant 0 : i32
    return %c0_i32, %c0_i32_0 : i32, i32
  }
  func.func @transform_4(%arg0: i32) -> (i32, i32) {
    %c0_i32 = arith.constant 0 : i32
    %c0_i32_0 = arith.constant 0 : i32
    %c0_i32_1 = arith.constant 0 : i32
    return %c0_i32, %c0_i32_0 : i32, i32
  }
  func.func @transform_5(%arg0: i32) -> (i32, i32) {
    %c0_i32 = arith.constant 0 : i32
    %c0_i32_0 = arith.constant 0 : i32
    %c0_i32_1 = arith.constant 0 : i32
    return %c0_i32, %c0_i32_0 : i32, i32
  }
  func.func @transform_6(%arg0: i32) -> (i32, i32) {
    %c0_i32 = arith.constant 0 : i32
    %c0_i32_0 = arith.constant 0 : i32
    %c0_i32_1 = arith.constant 0 : i32
    return %c0_i32, %c0_i32_0 : i32, i32
  }
  func.func @transform_7(%arg0: i32) -> (i32, i32) {
    %c0_i32 = arith.constant 0 : i32
    %c0_i32_0 = arith.constant 0 : i32
    return %arg0, %c0_i32 : i32, i32
  }
}

</mosaic_0001>

<bundles_post_ra>
// kernel: mlp_actor_critic_forward.1
= control target key start
LH: loop header
LB: loop body
LE: loop exit
PB: predicated region body
PF: predicated region fallthrough
CT: control target
= control target key end

     0   :  { %12 = vsyncpa [#allocation3], 0  ;;  %s653_s0 = inlined_call_operand.hbm [shape: f32[8,16], index: 0, kind: input, shape index: {}]   ;;  %s654_s1 = inlined_call_operand.hbm [shape: f32[16,32], index: 1, kind: input, shape index: {}]   ;;  %s655_s2 = inlined_call_operand.vmem [shape: f32[1,32], index: 2, kind: input, shape index: {}]   ;;  %s656_s3 = inlined_call_operand.hbm [shape: f32[32,32], index: 3, kind: input, shape index: {}]   ;;  %s657_s4 = inlined_call_operand.vmem [shape: f32[1,32], index: 4, kind: input, shape index: {}]   ;;  %s658_s5 = inlined_call_operand.hbm [shape: f32[32,128], index: 5, kind: input, shape index: {}]   ;;  %s659_s6 = inlined_call_operand.vmem [shape: f32[1,128], index: 6, kind: input, shape index: {}]   ;;  %s660_s7 = inlined_call_operand.vmem [shape: f32[8,128], index: 7, kind: output, shape index: {}]  }
   0x1   :  { %13 = vsyncpa [#allocation5], 0 }
   0x2   :  { %14 = vsyncpa [#allocation8], 0  ;;  %s532_s24 = smov [#allocation4]   ;;  %s438_s28 = scalar_lea.hbm %s654_s1, 256 }
   0x3   :  { %s30_s25 = sshll.u32 %s532_s24, 4  ;;  %p439_p0 = scmp.ne.s32.totalorder %s654_s1, %s438_s28  ;;  %s31_s25 = int_to_ptr.vmem [resolvable:$true] %s30_s25 }
   0x4   :  { %p442_p1 = scmp.lt.u32.totalorder %s438_s28, %s654_s1 }
   0x6   :  { %p444_p2 = pnand %p442_p1, %p439_p0 }
   0x8   :  { %447 = shalt.err (!%p444_p2)
}
   0x9   :  { %s448_s10 = scalar_lea.vmem %s31_s25, 256  ;;  %p453_p4 = scmp.lt.s32.totalorder %s31_s25, %s31_s25 }
   0xa   :  { %p449_p3 = scmp.ne.s32.totalorder %s31_s25, %s448_s10  ;;  %p454_p5 = scmp.lt.s32.totalorder %s448_s10, %s448_s10 }
   0xc   :  { %p455_p6 = por %p454_p5, %p453_p4 }
   0xe   :  { %p456_p7 = pnand %p455_p6, %p449_p3 }
  0x10   :  { %459 = shalt.err (!%p456_p7)
}
  0x11   :  { %s533_s11 = smov 128   ;;  %s534_s12 = smov 8  }
  0x12   :  { %36 = dma.hbm_to_vmem [thread:$0]  %s654_s1, 256, %s31_s25, [#allocation5], %s533_s11, %s533_s11, %s534_s12  }
  0x13   :  { %s535_s15 = smov [#allocation2]   ;;  %s536_s17 = smov [#allocation6]  }
  0x14   :  { %s21_s16 = sshll.u32 %s535_s15, 4  ;;  %s44_s18 = sshll.u32 %s536_s17, 4  ;;  %s22_s16 = int_to_ptr.vmem [resolvable:$true] %s21_s16  ;;  %s45_s18 = int_to_ptr.vmem [resolvable:$true] %s44_s18 }
  0x15   :  { %s460_s21 = scalar_lea.hbm %s653_s0, 128 }
  0x16   :  { %p461_p8 = scmp.ne.s32.totalorder %s653_s0, %s460_s21  ;;  %p464_p9 = scmp.lt.u32.totalorder %s460_s21, %s653_s0 }
  0x18   :  { %p466_p10 = pnand %p464_p9, %p461_p8 }
  0x1a   :  { %469 = shalt.err (!%p466_p10)
}
  0x1b   :  { %s470_s1 = scalar_lea.vmem %s22_s16, 128  ;;  %p475_p12 = scmp.lt.s32.totalorder %s22_s16, %s22_s16 }
  0x1c   :  { %p471_p11 = scmp.ne.s32.totalorder %s22_s16, %s470_s1  ;;  %p476_p13 = scmp.lt.s32.totalorder %s470_s1, %s470_s1 }
  0x1e   :  { %p477_p0 = por %p476_p13, %p475_p12 }
  0x20   :  { %p478_p1 = pnand %p477_p0, %p471_p11 }
  0x22   :  { %481 = shalt.err (!%p478_p1)
}
  0x23   :  { %24 = dma.hbm_to_vmem [thread:$0]  %s653_s0, 128, %s22_s16, [#allocation3]  }
  0x24   :  { %s482_s30 = scalar_lea.hbm %s656_s3, 512 }
  0x25   :  { %p483_p2 = scmp.ne.s32.totalorder %s656_s3, %s482_s30  ;;  %p486_p3 = scmp.lt.u32.totalorder %s482_s30, %s656_s3 }
  0x27   :  { %p488_p4 = pnand %p486_p3, %p483_p2 }
  0x29   :  { %491 = shalt.err (!%p488_p4)
}
  0x2a   :  { %s492_s14 = scalar_lea.vmem %s45_s18, 512  ;;  %p497_p6 = scmp.lt.s32.totalorder %s45_s18, %s45_s18 }
  0x2b   :  { %p493_p5 = scmp.ne.s32.totalorder %s45_s18, %s492_s14  ;;  %p498_p7 = scmp.lt.s32.totalorder %s492_s14, %s492_s14 }
  0x2d   :  { %p499_p8 = por %p498_p7, %p497_p6 }
  0x2f   :  { %p500_p9 = pnand %p499_p8, %p493_p5 }
  0x31   :  { %503 = shalt.err (!%p500_p9)
}
  0x32   :  { %50 = dma.hbm_to_vmem [thread:$0]  %s656_s3, 512, %s45_s18, [#allocation5], %s533_s11, %s533_s11, %s534_s12  }
  0x33   :  { %s537_s16 = smov [#allocation7]   ;;  %s504_s21 = scalar_lea.hbm %s658_s5, 512 }
  0x34   :  { %s58_s17 = sshll.u32 %s537_s16, 4  ;;  %p505_p10 = scmp.ne.s32.totalorder %s658_s5, %s504_s21  ;;  %s59_s17 = int_to_ptr.vmem [resolvable:$true] %s58_s17 }
  0x35   :  { %p508_p11 = scmp.lt.u32.totalorder %s504_s21, %s658_s5 }
  0x37   :  { %p510_p12 = pnand %p508_p11, %p505_p10 }
  0x39   :  { %513 = shalt.err (!%p510_p12)
}
  0x3a   :  { %s514_s1 = scalar_lea.vmem %s59_s17, 512  ;;  %p519_p0 = scmp.lt.s32.totalorder %s59_s17, %s59_s17 }
  0x3b   :  { %p515_p13 = scmp.ne.s32.totalorder %s59_s17, %s514_s1  ;;  %p520_p1 = scmp.lt.s32.totalorder %s514_s1, %s514_s1 }
  0x3d   :  { %p521_p2 = por %p520_p1, %p519_p0 }
  0x3f   :  { %p522_p3 = pnand %p521_p2, %p515_p13 }
  0x41   :  { %525 = shalt.err (!%p522_p3)
}
  0x42   :  { %64 = dma.hbm_to_vmem [thread:$0]  %s658_s5, 512, %s59_s17, [#allocation8], %s533_s11, %s533_s11, %s534_s12  }
  0x43   :  { %526 = dma.done.wait [#allocation3], 128  }
  0x44   :  { %527 = vsyncadd [#allocation3], 4294967168 }
  0x45   :  { %528 = dma.done.wait [#allocation5], 768  }
  0x46   :  { %529 = vsyncadd [#allocation5], 4294966528 }
  0x47   :  { %530 = dma.done.wait [#allocation8], 512  }
  0x48   :  { %531 = vsyncadd [#allocation8], 4294966784  ;;  %v538_v0 = vmov 0.0|0.0   ;;  %vm539_vm0 = vmmov 0   ;;  %v540_v1 = vmov 0.0   ;;  %v80_v2 = vld [vmem:[#allocation4] sm:$0xff]  ;;  %v334_v38 = vlaneseq }
  0x49   :  { %410 = vmatprep.subr.bf16.mxu0 %v538_v0  ;;  %385 = vmatprep.mubr.msk.f32.mxu0 %vm539_vm0, %v540_v1  ;;  %v81_v3 = vld [vmem:[#allocation4 + $0x8] sm:$0xff]  ;;  %v164_v5 = vld [vmem:[#allocation6] sm:$0xff]  ;;  %v165_v6 = vld [vmem:[#allocation6 + $0x8] sm:$0xff]  ;;  %vm89_vm1 = vcmask 130048   ;;  %vm175_vm2 = vcmask 261120  }
  0x4a   :  { %413 = vmatprep.subr.bf16.mxu1 %v538_v0  ;;  %396 = vmatprep.mubr.msk.f32.mxu1 %vm539_vm0, %v540_v1  ;;  %v411_v4 = vpack.c.bf16 %v81_v3, %v80_v2  ;;  %v414_v7 = vpack.c.bf16 %v165_v6, %v164_v5  ;;  %v79_v8 = vld [vmem:[#allocation2] sm:$0xff]  ;;  %v166_v9 = vld [vmem:[#allocation6 + $0x10] sm:$0xff]  ;;  %v167_v10 = vld [vmem:[#allocation6 + $0x18] sm:$0xff]  ;;  %v335_v42 = vand.u32 127, %v334_v38 }
  0x4b   :  { %v417_v11 = vpack.c.bf16 %v167_v10, %v166_v9  ;;  %v250_v12 = vld [vmem:[#allocation7] sm:$0xff]  ;;  %v251_v13 = vld [vmem:[#allocation7 + $0x8] sm:$0xff]  ;;  %v252_v20 = vld [vmem:[#allocation7 + $0x10] sm:$0xff] }
  0x4c   :  { %412 = vmatpush3.bf16.msra.mxu0 %v411_v4  ;;  %415 = vmatpush3.bf16.msra.mxu1 %v414_v7  ;;  %v420_v14 = vpack.c.bf16 %v251_v13, %v250_v12  ;;  %v362_v15 = vld [vmem:[%s655_s2] ss:$0 sm:$0xff]  ;;  %v253_v21 = vld [vmem:[#allocation7 + $0x18] sm:$0xff]  ;;  %vm336_vm4 = vcmp.lt.s32.totalorder %v335_v42, 9 }
  0x4d   :  { %419 = vmatprep.subr.bf16.mxu0 %v538_v0  ;;  %416 = vmatprep.subr.bf16.mxu1 %v538_v0  ;;  %v423_v22 = vpack.c.bf16 %v253_v21, %v252_v20  ;;  %v364_v23 = vld [vmem:[%s657_s4] ss:$0 sm:$0xff] }
  0x4e   :  { %v366_v28 = vld [vmem:[%s659_s6] ss:$0 sm:$0xff] }
  0x4f   :  { %386 = vmatmul.mubr.msk.f32.vlgmr.msra.gmra.mrb[0].mxu0 %vm89_vm1, %v79_v8 }
  0x50   :  { %407 = vmatprep.mubr.msk.f32.mxu0 %vm539_vm0, %v540_v1  ;;  %418 = vmatpush3.bf16.msra.mxu1 %v417_v11 }
  0x51   :  { %421 = vmatpush3.bf16.msra.mxu0 %v420_v14 }
  0x52   :  { %422 = vmatprep.subr.bf16.mxu0 %v538_v0 }
  0x55   :  { %424 = vmatpush3.bf16.msra.mxu0 %v423_v22 }
 0x122   :  { %v159_v16 = vpop.f32.mrb[0].mxu0 }
 0x123   :  { %v160_v17 = vadd.f32 %v362_v15, %v159_v16  ;;  %v387_v18 = vpop.f32.mrb[1].mxu0 }
 0x125   :  { %v163_v19 = vmax.f32 %v160_v17, 0.0 }
 0x127   :  { %397 = vmatmul.mubr.msk.f32.vlgmr.msra.gmra.mrb[0].mxu1 %vm175_vm2, %v163_v19 }
 0x1fa   :  { %v245_v24 = vpop.f32.mrb[0].mxu1 }
 0x1fb   :  { %v246_v25 = vadd.f32 %v364_v23, %v245_v24  ;;  %v398_v26 = vpop.f32.mrb[1].mxu1 }
 0x1fd   :  { %v249_v27 = vmax.f32 %v246_v25, 0.0 }
 0x1ff   :  { %408 = vmatmul.mubr.msk.f32.vlgmr.msra.gmra.mrb[2].mxu0 %vm175_vm2, %v249_v27 }
 0x2d2   :  { %v330_v29 = vpop.f32.mrb[2].mxu0 }
 0x2d3   :  { %v331_v30 = vadd.f32 %v366_v28, %v330_v29  ;;  %v409_v31 = vpop.f32.mrb[3].mxu0 }
 0x2d5   :  { %v338_v32 = vand.u32 2147483647, %v331_v30  ;;  %v337_v45 = vmax.f32 %v331_v30, 0.0 }
 0x2d7   :  { %v339_v33 = vsub.f32 0.0, %v338_v32 }
 0x2d9   :  { %v340_v34 = vmul.f32 1.442695, %v339_v33 }
 0x2db   :  { %434 = vpow2.f32 %v340_v34 }
 0x2e5   :  { %v435_v35 = vpop.eup %434 }
 0x2e6   :  { %v342_v36 = vadd.f32 1.0, %v435_v35  ;;  %v345_v37 = vmul.f32 -0.5, %v435_v35  ;;  %v348_v40 = vand.u32 2147483647, %v435_v35 }
 0x2e8   :  { %436 = vlog2.f32 %v342_v36  ;;  %v346_v39 = vadd.f32 1.0, %v345_v37  ;;  %vm349_vm3 = vcmp.lt.f32.partialorder %v348_v40, 0.0004427343 }
 0x2ea   :  { %v347_v44 = vmul.f32 %v435_v35, %v346_v39 }
 0x2f2   :  { %v437_v41 = vpop.eup %436 }
 0x2f3   :  { %v344_v43 = vmul.f32 0.6931472, %v437_v41 }
 0x2f5   :  { %v350_v46 = vsel %vm349_vm3, %v347_v44, %v344_v43 }
 0x2f6   :  { %v351_v47 = vadd.f32 %v350_v46, %v337_v45 }
 0x2f8   :  { %v352_v48 = vadd.f32 1e-08, %v351_v47 }
 0x2fa   :  { %v353_v49 = vsel %vm336_vm4, %v352_v48, %v331_v30 }
 0x2fb   :  { %354 = vst [vmem:[%s660_s7] sm:$0xff] %v353_v49 }
 0x2fc   :  { %359 = vsyncpa [#allocation3], 1 }
 0x2fd   :  { %360 = vsyncpa [#allocation5], 1 }
 0x2fe   :  { %361 = vsyncpa [#allocation8], 1 }

</bundles_post_ra>
